<compile_context>
chip_gen: v5e
topology: v5e:2x2
jax: 0.10.0
libtpu: 0.0.40
codegen_flags: <defaults>
</compile_context>

<pallas_src>
import math

import jax
import jax.numpy as jnp
from jax.experimental import pallas as pl
from jax.experimental.pallas import tpu as pltpu


def _round_up(x, m):
    return ((x + m - 1) // m) * m


def _cdiv(a, b):
    return (a + b - 1) // b


def _vmem_budget_bytes():
    """~80% of physical VMEM (v7x: 64 MiB, v5e/v6e: 128 MiB).

    Conservative 64 MiB fallback if the query is unavailable, so we never
    overshoot a v7x part.
    """
    cap = 64 * 1024 * 1024
    try:
        info = pltpu.get_tpu_info()
        cap = int(getattr(info, "vmem_capacity_bytes", cap)) or cap
    except Exception:
        pass
    return int(cap * 0.8)


def _linear_kernel(x_ref, w_ref, b_ref, o_ref, acc_ref):
    """One (tm, tn) output tile, accumulated over the K grid axis.

    x_ref: (tm, tk); w_ref: (tk, tn)  [weight pre-transposed to [K, N] once at
    init, so the MXU sees a plain contraction]; b_ref: (1, tn) f32;
    o_ref: (tm, tn); acc_ref: (tm, tn) f32 scratch.
    """
    k = pl.program_id(2)
    partial = jnp.dot(x_ref[...], w_ref[...], preferred_element_type=jnp.float32)

    @pl.when(k == 0)
    def _first():
        # Fuse the bias into the first partial product: no zero-fill of the
        # accumulator and no epilogue VPU add.
        acc_ref[...] = partial + b_ref[...]

    @pl.when(k != 0)
    def _accum():
        acc_ref[...] += partial

    @pl.when(k == pl.num_programs(2) - 1)
    def _finish():
        o_ref[...] = acc_ref[...].astype(o_ref.dtype)


class SparseLinearTPU:
    """y = x @ weight.T + bias with weight:[N, K] (PyTorch nn.Linear layout).

    All weight preprocessing (optional cast, transpose to [K, N], padding to
    tile multiples) happens exactly once at construction, so repeated forward
    calls never pay an extra HBM read+write of the dominant tensor.
    """

    TM_MAX = 1024  # largest M tile considered (keeps the VMEM fit bounded)

    def __init__(self, weight, bias=None, *, compute_dtype=None,
                 out_dtype=None, tn=None, tk=None):
        w = jnp.asarray(weight)
        N, K = w.shape
        self.out_features = int(N)
        self.in_features = int(K)
        self.compute_dtype = compute_dtype
        self.out_dtype = out_dtype

        if compute_dtype is not None:
            # Recommended for memory-bound layers: bf16 weights halve W HBM
            # bytes and hit the fast bf16 MXU path (f32 accumulation is kept).
            w = w.astype(compute_dtype)
        self._isz = jnp.dtype(w.dtype).itemsize
        self._sub = max(8, 32 // self._isz)     # sublane multiple for tm

        self._budget = _vmem_budget_bytes()

        # ---- N / K tile sizes (lane dims, multiples of 128) -----------------
        n_full = _round_up(N, 128)
        k_full = _round_up(K, 128)
        tn_cap = 2048 if tn is None else max(128, _round_up(int(tn), 128))
        tk_cap = 1024 if tk is None else max(128, _round_up(int(tk), 128))

        def _eff(cap, full):
            return min(cap, full)

        # Fit (TM_MAX, tn, tk) to the VMEM budget.  Shrink tk first (it does
        # not change HBM traffic, only step count), then tn.
        while self._vmem_est(self.TM_MAX, _eff(tn_cap, n_full),
                             _eff(tk_cap, k_full), 4, w_bufs=2) > self._budget:
            if tk_cap > 256:
                tk_cap //= 2
            elif tn_cap > 256:
                tn_cap //= 2
            elif tk_cap > 128:
                tk_cap //= 2
            elif tn_cap > 128:
                tn_cap //= 2
            else:
                break
        self.tn = _eff(tn_cap, n_full)
        self.tk = _eff(tk_cap, k_full)

        # ---- one-time weight / bias prep ------------------------------------
        self.N_pad = _round_up(N, self.tn)
        self.K_pad = _round_up(K, self.tk)

        wT = w.T                                 # [K, N]; one-time transpose
        if (self.K_pad, self.N_pad) != (K, N):
            wT = jnp.pad(wT, ((0, self.K_pad - K), (0, self.N_pad - N)))
        self._wT = wT

        if bias is None:
            b = jnp.zeros((N,), jnp.float32)
        else:
            b = jnp.asarray(bias).astype(jnp.float32)
        b = b.reshape(1, N)
        if self.N_pad != N:
            b = jnp.pad(b, ((0, 0), (0, self.N_pad - N)))
        self._bias = b

    # ------------------------------------------------------------------ utils
    def _vmem_est(self, tm, tn, tk, out_isz, w_bufs):
        return (2 * tm * tk * self._isz            # x, double-buffered
                + w_bufs * tk * tn * self._isz     # W
                + 2 * tn * 4                       # bias
                + 2 * tm * tn * out_isz            # output
                + tm * tn * 4)                     # f32 accumulator

    def _pick_tm(self, M):
        """Fewest passes over W first (dominant HBM term), then least padding
        waste, then the larger tile. 8/16 sublane multiples respected."""
        cands = {128, 256, 512, self.TM_MAX}
        if M <= self.TM_MAX:
            cands.add(_round_up(M, self._sub))
        return min(cands, key=lambda t: (_cdiv(M, t), _round_up(M, t), -t))

    # ------------------------------------------------------------------ call
    def __call__(self, x):
        orig_shape = x.shape
        K = orig_shape[-1]
        if K != self.in_features:
            raise ValueError(f"expected last dim {self.in_features}, got {K}")

        out_dtype = self.out_dtype or x.dtype
        out_isz = jnp.dtype(out_dtype).itemsize

        x2 = x.reshape(-1, K)
        if self.compute_dtype is not None and x2.dtype != self.compute_dtype:
            x2 = x2.astype(self.compute_dtype)
        M = x2.shape[0]

        tm = self._pick_tm(M)
        tn = self.tn
        M_pad = _round_up(M, tm)

        # v7x has 2 TensorCores sharing the parallel grid axes; make sure there
        # are >= 2 parallel (i, j) blocks when the problem is splittable.
        # Splitting tn adds no W traffic, so this is free on 1-TC chips too.
        if (M_pad // tm) * (self.N_pad // tn) < 2:
            if tn >= 256 and self.N_pad % 256 == 0:
                tn //= 2
            elif tm >= 256:
                tm //= 2
                M_pad = _round_up(M, tm)

        if (M_pad, self.K_pad) != (M, K):
            x2 = jnp.pad(x2, ((0, M_pad - M), (0, self.K_pad - K)))

        grid = (M_pad // tm, self.N_pad // tn, self.K_pad // self.tk)

        # Small-M (single pass over W) regime = a pure one-pass W stream: go a
        # buffer deeper on W so the DMA stream stays saturated, but only when
        # there are enough steps for it to matter.
        w_bufs = 3 if (grid[0] == 1 and grid[1] * grid[2] >= 4) else 2
        if self._vmem_est(tm, tn, self.tk, out_isz, w_bufs) > self._budget:
            w_bufs = 2

        try:
            out = self._run(x2, tm, tn, grid, w_bufs, out_dtype, out_isz, M_pad)
        except Exception:
            if w_bufs == 2:
                raise
            # Fall back to plain double buffering if Buffered(3) is unsupported.
            out = self._run(x2, tm, tn, grid, 2, out_dtype, out_isz, M_pad)

        out = out[:M, :self.out_features]
        return out.reshape(*orig_shape[:-1], self.out_features)

    def _run(self, x2, tm, tn, grid, w_bufs, out_dtype, out_isz, M_pad):
        tk = self.tk
        isz = self._isz
        gi, gj, gk = grid

        if w_bufs != 2:
            try:
                w_spec = pl.BlockSpec((tk, tn), lambda i, j, k: (k, j),
                                      pipeline_mode=pl.Buffered(w_bufs))
            except TypeError:
                w_spec = pl.BlockSpec((tk, tn), lambda i, j, k: (k, j))
        else:
            w_spec = pl.BlockSpec((tk, tn), lambda i, j, k: (k, j))

        vmem_limit = int(min(
            self._budget,
            max(32 * 1024 * 1024,
                2 * self._vmem_est(tm, tn, tk, out_isz, w_bufs))))

        cost = pl.CostEstimate(
            flops=2 * M_pad * self.N_pad * self.K_pad,
            transcendentals=0,
            # x is streamed once per j-tile, W once per i-tile, out written once.
            bytes_accessed=int(gj * M_pad * self.K_pad * isz
                               + gi * self.K_pad * self.N_pad * isz
                               + M_pad * self.N_pad * out_isz
                               + gi * gj * tn * 4),
        )

        return pl.pallas_call(
            _linear_kernel,
            out_shape=jax.ShapeDtypeStruct((M_pad, self.N_pad), out_dtype),
            grid_spec=pltpu.PrefetchScalarGridSpec(
                num_scalar_prefetch=0,
                grid=grid,
                in_specs=[
                    pl.BlockSpec((tm, tk), lambda i, j, k: (i, k)),  # x tile
                    w_spec,                                          # W^T [K,N]
                    pl.BlockSpec((1, tn), lambda i, j, k: (0, j)),   # bias tile
                ],
                out_specs=pl.BlockSpec((tm, tn), lambda i, j, k: (i, j)),
                scratch_shapes=[pltpu.VMEM((tm, tn), jnp.float32)],
            ),
            compiler_params=pltpu.CompilerParams(
                dimension_semantics=("parallel", "parallel", "arbitrary"),
                vmem_limit_bytes=vmem_limit,
            ),
            cost_estimate=cost,
        )(x2, self._wT, self._bias)


def sparse_linear(x, weight, bias=None, **kwargs):
    """One-shot convenience wrapper.  For repeated forward calls construct
    SparseLinearTPU once so the weight cast/transpose/pad is paid once."""
    return SparseLinearTPU(weight, bias, **kwargs)(x)


if __name__ == "__main__":
    in_features = 32
    out_features = 48

    key = jax.random.PRNGKey(0)
    kx, kw, kb, kx2 = jax.random.split(key, 4)

    # nn.Linear.reset_parameters(): kaiming_uniform_(a=sqrt(5)) and the bias
    # init both reduce to U(-1/sqrt(fan_in), 1/sqrt(fan_in)).
    bound = 1.0 / math.sqrt(in_features)
    weight = jax.random.uniform(
        kw, (out_features, in_features), jnp.float32, -bound, bound)
    bias = jax.random.uniform(
        kb, (out_features,), jnp.float32, -bound, bound)

    # Weight prep hoisted: done once here, reused by every call below.
    layer = SparseLinearTPU(weight, bias)

    # Case 1: plain 2-D input, f32 compute.
    x = jax.random.normal(kx, (16, in_features), jnp.float32)
    y = jax.block_until_ready(layer(x))
    y_ref = x @ weight.T + bias
    assert y.shape == (16, out_features)
    assert jnp.allclose(y, y_ref, atol=1e-5, rtol=1e-5)

    # Case 2: extra leading dims + ragged batch (nn.Linear (*, H_in) contract).
    x3 = jax.random.normal(kx2, (2, 13, in_features), jnp.float32)
    y3 = jax.block_until_ready(layer(x3))
    y3_ref = x3 @ weight.T + bias
    assert y3.shape == (2, 13, out_features)
    assert jnp.allclose(y3, y3_ref, atol=1e-5, rtol=1e-5)

    # Case 3: bf16 compute path (f32 accumulate) -- recommended default for
    # memory-bound layers when tolerance allows (halves W HBM bytes).
    layer_bf16 = SparseLinearTPU(weight, bias, compute_dtype=jnp.bfloat16,
                                 out_dtype=jnp.float32)
    yb = jax.block_until_ready(layer_bf16(x))
    assert yb.shape == (16, out_features)
    assert jnp.allclose(yb, y_ref, atol=5e-2, rtol=5e-2)

    print("KERNEL_OK")
</pallas_src>

<mosaic_0001>
module attributes {stable_mosaic.version = 11 : i64} {
  func.func @_linear_kernel(%arg0: i32, %arg1: i32, %arg2: i32, %arg3: memref<16x128xf32, #tpu.memory_space<vmem>>, %arg4: memref<128x128xf32, #tpu.memory_space<vmem>>, %arg5: memref<1x128xf32, #tpu.memory_space<vmem>>, %arg6: memref<16x128xf32, #tpu.memory_space<vmem>>, %arg7: memref<16x128xf32, #tpu.memory_space<vmem>>) attributes {dimension_semantics = [#tpu.dimension_semantics<parallel>, #tpu.dimension_semantics<parallel>, #tpu.dimension_semantics<arbitrary>], iteration_bounds = array<i64: 1, 1, 1>, scalar_prefetch = 0 : i64, scratch_operands = 1 : i64, tpu.core_type = #tpu.core_type<tc>, window_params = [{transform_indices = @transform_0, window_bounds = array<i64: 16, 128>}, {transform_indices = @transform_1, window_bounds = array<i64: 128, 128>}, {transform_indices = @transform_2, window_bounds = array<i64: 1, 128>}, {transform_indices = @transform_3, window_bounds = array<i64: 16, 128>}]} {
    %c0 = arith.constant 0 : index
    %c0_0 = arith.constant 0 : index
    %0 = vector.load %arg3[%c0, %c0_0] : memref<16x128xf32, #tpu.memory_space<vmem>>, vector<16x128xf32>
    %c0_1 = arith.constant 0 : index
    %c0_2 = arith.constant 0 : index
    %1 = vector.load %arg4[%c0_1, %c0_2] : memref<128x128xf32, #tpu.memory_space<vmem>>, vector<128x128xf32>
    %cst = arith.constant dense<0.000000e+00> : vector<16x128xf32>
    %2 = tpu.matmul %0, %1, %cst {dimension_numbers = #tpu.dot_dimension_numbers<[1], [0], [0], [1], [0, 0, 1, 1], [], []>} : vector<16x128xf32>, vector<128x128xf32>, vector<16x128xf32> -> vector<16x128xf32>
    %c0_i32 = arith.constant 0 : i32
    %3 = arith.cmpi eq, %arg2, %c0_i32 : i32
    %4 = arith.extui %3 : i1 to i32
    %c0_i32_3 = arith.constant 0 : i32
    %5 = arith.cmpi ne, %4, %c0_i32_3 : i32
    scf.if %5 {
      %c0_8 = arith.constant 0 : index
      %c0_9 = arith.constant 0 : index
      %12 = vector.load %arg5[%c0_8, %c0_9] : memref<1x128xf32, #tpu.memory_space<vmem>>, vector<1x128xf32>
      %13 = vector.broadcast %12 : vector<1x128xf32> to vector<16x128xf32>
      %14 = arith.addf %2, %13 : vector<16x128xf32>
      %c0_10 = arith.constant 0 : index
      %c0_11 = arith.constant 0 : index
      %15 = vector.load %arg7[%c0_10, %c0_11] : memref<16x128xf32, #tpu.memory_space<vmem>>, vector<16x128xf32>
      tpu.vector_store %arg7[%c0_10, %c0_11], %14 {strides = array<i32>} : memref<16x128xf32, #tpu.memory_space<vmem>>, vector<16x128xf32>,
    } else {
    }
    %c0_i32_4 = arith.constant 0 : i32
    %6 = arith.cmpi ne, %arg2, %c0_i32_4 : i32
    %7 = arith.extui %6 : i1 to i32
    %c0_i32_5 = arith.constant 0 : i32
    %8 = arith.cmpi ne, %7, %c0_i32_5 : i32
    scf.if %8 {
      %c0_8 = arith.constant 0 : index
      %c0_9 = arith.constant 0 : index
      %12 = vector.load %arg7[%c0_8, %c0_9] : memref<16x128xf32, #tpu.memory_space<vmem>>, vector<16x128xf32>
      %13 = arith.addf %12, %2 : vector<16x128xf32>
      %c0_10 = arith.constant 0 : index
      %c0_11 = arith.constant 0 : index
      %14 = vector.load %arg7[%c0_10, %c0_11] : memref<16x128xf32, #tpu.memory_space<vmem>>, vector<16x128xf32>
      tpu.vector_store %arg7[%c0_10, %c0_11], %13 {strides = array<i32>} : memref<16x128xf32, #tpu.memory_space<vmem>>, vector<16x128xf32>,
    } else {
    }
    %c0_i32_6 = arith.constant 0 : i32
    %9 = arith.cmpi eq, %arg2, %c0_i32_6 : i32
    %10 = arith.extui %9 : i1 to i32
    %c0_i32_7 = arith.constant 0 : i32
    %11 = arith.cmpi ne, %10, %c0_i32_7 : i32
    scf.if %11 {
      %c0_8 = arith.constant 0 : index
      %c0_9 = arith.constant 0 : index
      %12 = vector.load %arg7[%c0_8, %c0_9] : memref<16x128xf32, #tpu.memory_space<vmem>>, vector<16x128xf32>
      %c0_10 = arith.constant 0 : index
      %c0_11 = arith.constant 0 : index
      %13 = vector.load %arg6[%c0_10, %c0_11] : memref<16x128xf32, #tpu.memory_space<vmem>>, vector<16x128xf32>
      tpu.vector_store %arg6[%c0_10, %c0_11], %12 {strides = array<i32>} : memref<16x128xf32, #tpu.memory_space<vmem>>, vector<16x128xf32>,
    } else {
    }
    return
  }
  func.func @transform_0(%arg0: i32, %arg1: i32, %arg2: i32) -> (i32, i32) {
    %c0_i32 = arith.constant 0 : i32
    return %arg0, %arg2 : i32, i32
  }
  func.func @transform_1(%arg0: i32, %arg1: i32, %arg2: i32) -> (i32, i32) {
    %c0_i32 = arith.constant 0 : i32
    return %arg2, %arg1 : i32, i32
  }
  func.func @transform_2(%arg0: i32, %arg1: i32, %arg2: i32) -> (i32, i32) {
    %c0_i32 = arith.constant 0 : i32
    %c0_i32_0 = arith.constant 0 : i32
    return %c0_i32, %arg1 : i32, i32
  }
  func.func @transform_3(%arg0: i32, %arg1: i32, %arg2: i32) -> (i32, i32) {
    %c0_i32 = arith.constant 0 : i32
    return %arg0, %arg1 : i32, i32
  }
}

</mosaic_0001>

<bundles_post_ra>
// kernel: tpu_custom_call.1
= control target key start
LH: loop header
LB: loop body
LE: loop exit
PB: predicated region body
PF: predicated region fallthrough
CT: control target
= control target key end

     0   :  { %8 = vsyncpa [#allocation4], 0  ;;  %s283_s0 = inlined_call_operand.hbm [shape: f32[16,128], index: 0, kind: input, shape index: {}]   ;;  %s284_s1 = inlined_call_operand.hbm [shape: f32[128,128], index: 1, kind: input, shape index: {}]   ;;  %s285_s2 = inlined_call_operand.vmem [shape: f32[1,128], index: 2, kind: input, shape index: {}]   ;;  %s286_s3 = inlined_call_operand.hbm [shape: f32[16,128], index: 3, kind: output, shape index: {}]  }
   0x1   :  { %9 = vsyncpa [#allocation7], 0 }
   0x2   :  { %10 = vsyncpa [#allocation5], 0  ;;  %s15_s14 = sshll.u32 %s283_s0, 4  ;;  %s237_s15 = smov [#allocation3]   ;;  %s16_s14 = int_to_ptr.hbm [resolvable:$true] %s15_s14 }
   0x3   :  { %s17_s16 = sshll.u32 %s237_s15, 4  ;;  %s28_s19 = sshll.u32 %s284_s1, 4  ;;  %s18_s16 = int_to_ptr.vmem [resolvable:$true] %s17_s16  ;;  %s29_s19 = int_to_ptr.hbm [resolvable:$true] %s28_s19 }
   0x4   :  { %s238_s20 = smov 128   ;;  %s239_s21 = smov 8  }
   0x5   :  { %23 = dma.hbm_to_vmem [thread:$0]  %s16_s14, 256, %s18_s16, [#allocation4], %s238_s20, %s238_s20, %s239_s21  }
   0x6   :  { %s240_s22 = smov [#allocation6]  }
   0x7   :  { %s30_s23 = sshll.u32 %s240_s22, 4  ;;  %s31_s23 = int_to_ptr.vmem [resolvable:$true] %s30_s23 }
   0x8   :  { %36 = dma.hbm_to_vmem [thread:$0]  %s29_s19, 2048, %s31_s23, [#allocation7], %s238_s20, %s238_s20, %s239_s21  }
   0x9   :  { %231 = dma.done.wait [#allocation4], 256  }
   0xa   :  { %232 = vsyncadd [#allocation4], 4294967040 }
   0xb   :  { %233 = dma.done.wait [#allocation7], 2048  }
   0xc   :  { %234 = vsyncadd [#allocation7], 4294965248  ;;  %v64_v0 = vld [vmem:[#allocation6 + $0x78] sm:$0xff]  ;;  %v63_v1 = vld [vmem:[#allocation6 + $0x70] sm:$0xff]  ;;  %s241_s24 = smov [#allocation8]   ;;  %s123_s28 = sshll.u32 %s286_s3, 4  ;;  %s124_s28 = int_to_ptr.hbm [resolvable:$true] %s123_s28 }
   0xd   :  { %65 = vmatpush.msra.mxu0 %v64_v0  ;;  %137 = vmatpush.msra.mxu1 %v64_v0  ;;  %v62_v2 = vld [vmem:[#allocation6 + $0x68] sm:$0xff]  ;;  %v61_v3 = vld [vmem:[#allocation6 + $0x60] sm:$0xff]  ;;  %v60_v4 = vld [vmem:[#allocation6 + $0x58] sm:$0xff]  ;;  %s121_s25 = sshll.u32 %s241_s24, 4  ;;  %s122_s25 = int_to_ptr.vmem [resolvable:$true] %s121_s25 }
   0xe   :  { %v59_v5 = vld [vmem:[#allocation6 + $0x50] sm:$0xff]  ;;  %v58_v6 = vld [vmem:[#allocation6 + $0x48] sm:$0xff]  ;;  %v57_v7 = vld [vmem:[#allocation6 + $0x40] sm:$0xff] }
   0xf   :  { %66 = vmatpush.msra.mxu0 %v63_v1  ;;  %138 = vmatpush.msra.mxu1 %v63_v1  ;;  %v56_v8 = vld [vmem:[#allocation6 + $0x38] sm:$0xff]  ;;  %v55_v9 = vld [vmem:[#allocation6 + $0x30] sm:$0xff]  ;;  %v54_v10 = vld [vmem:[#allocation6 + $0x28] sm:$0xff] }
  0x10   :  { %v53_v11 = vld [vmem:[#allocation6 + $0x20] sm:$0xff]  ;;  %v52_v12 = vld [vmem:[#allocation6 + $0x18] sm:$0xff]  ;;  %v51_v13 = vld [vmem:[#allocation6 + $0x10] sm:$0xff] }
  0x11   :  { %67 = vmatpush.msra.mxu0 %v62_v2  ;;  %139 = vmatpush.msra.mxu1 %v62_v2  ;;  %v50_v14 = vld [vmem:[#allocation6 + $0x8] sm:$0xff]  ;;  %v49_v15 = vld [vmem:[#allocation6] sm:$0xff]  ;;  %v47_v16 = vld [vmem:[#allocation3] sm:$0xff] }
  0x12   :  { %v48_v17 = vld [vmem:[#allocation3 + $0x8] sm:$0xff]  ;;  %v158_v18 = vld [vmem:[%s285_s2] ss:$0 sm:$0xff] }
  0x13   :  { %68 = vmatpush.msra.mxu0 %v61_v3  ;;  %140 = vmatpush.msra.mxu1 %v61_v3 }
  0x15   :  { %69 = vmatpush.msra.mxu0 %v60_v4  ;;  %141 = vmatpush.msra.mxu1 %v60_v4 }
  0x17   :  { %70 = vmatpush.msra.mxu0 %v59_v5  ;;  %142 = vmatpush.msra.mxu1 %v59_v5 }
  0x19   :  { %71 = vmatpush.msra.mxu0 %v58_v6  ;;  %143 = vmatpush.msra.mxu1 %v58_v6 }
  0x1b   :  { %72 = vmatpush.msra.mxu0 %v57_v7  ;;  %144 = vmatpush.msra.mxu1 %v57_v7 }
  0x1d   :  { %73 = vmatpush.msra.mxu0 %v56_v8  ;;  %145 = vmatpush.msra.mxu1 %v56_v8 }
  0x1f   :  { %74 = vmatpush.msra.mxu0 %v55_v9  ;;  %146 = vmatpush.msra.mxu1 %v55_v9 }
  0x21   :  { %75 = vmatpush.msra.mxu0 %v54_v10  ;;  %147 = vmatpush.msra.mxu1 %v54_v10 }
  0x23   :  { %76 = vmatpush.msra.mxu0 %v53_v11  ;;  %148 = vmatpush.msra.mxu1 %v53_v11 }
  0x25   :  { %77 = vmatpush.msra.mxu0 %v52_v12  ;;  %149 = vmatpush.msra.mxu1 %v52_v12 }
  0x27   :  { %78 = vmatpush.msra.mxu0 %v51_v13  ;;  %150 = vmatpush.msra.mxu1 %v51_v13 }
  0x29   :  { %79 = vmatpush.msra.mxu0 %v50_v14  ;;  %151 = vmatpush.msra.mxu1 %v50_v14 }
  0x2b   :  { %80 = vmatpush.msra.mxu0 %v49_v15  ;;  %152 = vmatpush.msra.mxu1 %v49_v15 }
  0x2c   :  { %81 = vmatmul.f32.vlgmr.msra.gmra.mxu0 %v47_v16  ;;  %84 = vmatmul.f32.vlgmr.msra.gmra.mxu1 %v48_v17 }
  0xa9   :  { %v82_v19 = vpop.f32.mrf.mxu0  ;;  %v85_v20 = vpop.f32.mrf.mxu1 }
  0xaa   :  { %v96_v21 = vadd.f32 %v158_v18, %v82_v19  ;;  %v97_v22 = vadd.f32 %v158_v18, %v85_v20 }
  0xac   :  { %115 = vst [vmem:[#allocation8] sm:$0xff] %v96_v21 }
  0xad   :  { %116 = vst [vmem:[#allocation8 + $0x8] sm:$0xff] %v97_v22 }
  0xae   :  { %129 = dma.vmem_to_hbm [thread:$0]  %s122_s25, 256, %s124_s28, [#allocation5], %s238_s20, %s238_s20, %s239_s21  }
  0xaf   :  { %235 = dma.done.wait [#allocation5], 256  }
  0xb0   :  { %236 = vsyncadd [#allocation5], 4294967040 }
  0xb1   :  { %134 = vsyncpa [#allocation4], 1 }
  0xb2   :  { %135 = vsyncpa [#allocation7], 1 }
  0xb3   :  { %136 = vsyncpa [#allocation5], 1 }

</bundles_post_ra>
